<compile_context>
chip_gen: v5e
topology: v5e:2x2
jax: 0.10.0
libtpu: 0.0.40
codegen_flags: <defaults>
</compile_context>

<pallas_src>
import functools

import jax
import jax.numpy as jnp
from jax.experimental import pallas as pl
from jax.experimental.pallas import tpu as pltpu

NEGATIVE_SLOPE = 0.05
_OFFSET_RAW = -0.6931                        # module default (intentionally truncated ln 2)
ALPHA = NEGATIVE_SLOPE
OFFSET = (1.0 - ALPHA) * _OFFSET_RAW         # matches module __init__
SOFTPLUS_THRESHOLD = 20.0                    # torch.nn.Softplus default

LANE = 128
SMALL_FALLBACK_ELEMS = 1 << 10               # below this, launch overhead dominates; let XLA fuse


def _round_up(x, m):
    return ((x + m - 1) // m) * m


def _vmem_capacity_bytes():
    """Physical VMEM per TensorCore; conservative fallback if query unavailable."""
    try:
        return int(pltpu.get_tpu_info().vmem_capacity_bytes)
    except Exception:
        return 64 << 20                       # v7x per-TC physical (the smallest)


def _bf16_eup_supported():
    """bf16 VPU/EUP exists on v6e/v7x only; v5e and older must compute in f32."""
    try:
        kind = jax.devices()[0].device_kind.lower()
    except Exception:
        return False
    return ("v6" in kind) or ("v7" in kind)


def _leaky_softplus_math(x, compute_dtype):
    """Elementwise math in compute_dtype (PyTorch-matching softplus threshold)."""
    x = x.astype(compute_dtype)
    thr = jnp.asarray(SOFTPLUS_THRESHOLD, compute_dtype)
    sp = jnp.where(x > thr, x, jnp.log1p(jnp.exp(jnp.minimum(x, thr))))
    return (jnp.asarray(ALPHA, compute_dtype) * x
            + jnp.asarray(1.0 - ALPHA, compute_dtype) * sp
            + jnp.asarray(OFFSET, compute_dtype))


def _leaky_softplus_kernel(x_ref, o_ref, *, compute_dtype):
    o_ref[...] = _leaky_softplus_math(x_ref[...], compute_dtype).astype(o_ref.dtype)


def leaky_softplus(xs: jax.Array) -> jax.Array:
    """Elementwise LeakySoftplus. Any shape / float dtype; returns same shape/dtype."""
    orig_shape = xs.shape
    orig_dtype = xs.dtype
    n = xs.size

    if n == 0:
        return xs
    if n < SMALL_FALLBACK_ELEMS:
        return _leaky_softplus_math(xs, jnp.float32).astype(orig_dtype)

    # bf16 transcendental path only where the EUP supports it (v6e/v7x).
    compute_dtype = (jnp.bfloat16
                     if (orig_dtype == jnp.bfloat16 and _bf16_eup_supported())
                     else jnp.float32)

    flat = xs.reshape(-1)
    tail = n % LANE
    n_main = n - tail
    rows = n_main // LANE
    x2d = (flat[:n_main] if tail else flat).reshape(rows, LANE)

    itemsize_in = jnp.dtype(orig_dtype).itemsize
    itemsize_cmp = jnp.dtype(compute_dtype).itemsize
    sublane_mult = {4: 8, 2: 16, 1: 32}.get(itemsize_in, 8)

    # Generation-aware block sizing: ~8 MiB blocks on v5e/v6e (128 MiB VMEM),
    # ~4 MiB on v7x (64 MiB VMEM), sized against the widest live dtype so the
    # in-kernel elementwise temporaries stay bounded too.
    vmem_cap = _vmem_capacity_bytes()
    block_bytes = min(8 << 20, vmem_cap // 16)
    max_block_rows = max(block_bytes // (LANE * max(itemsize_in, itemsize_cmp)), 256)

    if rows >= 64:
        # At least 2 grid steps so v7x's 2 TensorCores both get work.
        row_tile = min(max_block_rows, _round_up(pl.cdiv(rows, 2), 32))
    else:
        row_tile = _round_up(rows, sublane_mult)

    grid = (pl.cdiv(rows, row_tile),)

    # Explicit VMEM budget: double-buffered in+out blocks + f32/bf16 temporaries
    # + headroom; stays under physical VMEM on every generation.
    block_elems = row_tile * LANE
    vmem_limit = int(4 * block_elems * itemsize_in          # 2x in + 2x out buffers
                     + 4 * block_elems * itemsize_cmp       # elementwise temporaries
                     + (4 << 20))                            # headroom
    vmem_limit = max(16 << 20, min(vmem_limit, max(vmem_cap - (8 << 20), 16 << 20)))

    kernel = functools.partial(_leaky_softplus_kernel, compute_dtype=compute_dtype)

    out2d = pl.pallas_call(
        kernel,
        out_shape=jax.ShapeDtypeStruct((rows, LANE), orig_dtype),
        grid_spec=pltpu.PrefetchScalarGridSpec(
            num_scalar_prefetch=0,
            grid=grid,
            in_specs=[pl.BlockSpec((row_tile, LANE), lambda i: (i, 0))],
            out_specs=pl.BlockSpec((row_tile, LANE), lambda i: (i, 0)),
        ),
        compiler_params=pltpu.CompilerParams(
            dimension_semantics=("parallel",),
            vmem_limit_bytes=vmem_limit,
        ),
        cost_estimate=pl.CostEstimate(
            flops=6 * n_main,
            transcendentals=2 * n_main,
            bytes_accessed=2 * n_main * itemsize_in,
        ),
    )(x2d)

    out_main = out2d.reshape(-1)
    if tail:
        # <=127-element tail: tiny jnp fallback, stitched on (avoids full-array pad+slice).
        tail_out = _leaky_softplus_math(flat[n_main:], jnp.float32).astype(orig_dtype)
        out_flat = jnp.concatenate([out_main, tail_out])
    else:
        out_flat = out_main
    return out_flat.reshape(orig_shape)


def _reference(xs: jax.Array) -> jax.Array:
    x = xs.astype(jnp.float32)
    sp = jnp.where(x > SOFTPLUS_THRESHOLD, x,
                   jnp.log1p(jnp.exp(jnp.minimum(x, SOFTPLUS_THRESHOLD))))
    return (ALPHA * x + (1.0 - ALPHA) * sp + OFFSET).astype(xs.dtype)


if __name__ == "__main__":
    key = jax.random.PRNGKey(0)
    k1, k2, k3, k4 = jax.random.split(key, 4)

    # Spec-sized NCHW input (2048 elems -> single 16x128 block).
    x_small = jax.random.normal(k1, (2, 4, 16, 16), dtype=jnp.float32) * 5.0
    # Larger input exercising a multi-step parallel grid (1024 rows -> 2 blocks).
    x_big = jax.random.normal(k2, (2, 4, 128, 128), dtype=jnp.float32) * 5.0
    # Non-128-divisible size: Pallas on the aligned prefix + jnp tail stitch.
    x_ragged = jax.random.normal(k3, (4501,), dtype=jnp.float32) * 5.0
    # bf16 input: bf16 EUP path on v6e/v7x, f32 path on v5e.
    x_bf16 = (jax.random.normal(k4, (2, 4, 64, 64), dtype=jnp.float32) * 5.0
              ).astype(jnp.bfloat16)

    cases = (
        (x_small, 1e-4, 1e-5),
        (x_big, 1e-4, 1e-5),
        (x_ragged, 1e-4, 1e-5),
        (x_bf16, 5e-2, 5e-2),
    )
    for x, atol, rtol in cases:
        y = jax.block_until_ready(leaky_softplus(x))
        y_ref = _reference(x)
        assert y.shape == x.shape and y.dtype == x.dtype
        assert jnp.allclose(y.astype(jnp.float32), y_ref.astype(jnp.float32),
                            atol=atol, rtol=rtol), "mismatch vs reference"

    print("KERNEL_OK")
</pallas_src>

<mosaic_0001>
module attributes {stable_mosaic.version = 11 : i64} {
  func.func @_leaky_softplus_kernel(%arg0: i32, %arg1: memref<16x128xf32, #tpu.memory_space<vmem>>, %arg2: memref<16x128xf32, #tpu.memory_space<vmem>>) attributes {dimension_semantics = [#tpu.dimension_semantics<parallel>], iteration_bounds = array<i64: 1>, scalar_prefetch = 0 : i64, scratch_operands = 0 : i64, tpu.core_type = #tpu.core_type<tc>, window_params = [{transform_indices = @transform_0, window_bounds = array<i64: 16, 128>}, {transform_indices = @transform_1, window_bounds = array<i64: 16, 128>}]} {
    %c0 = arith.constant 0 : index
    %c0_0 = arith.constant 0 : index
    %0 = vector.load %arg1[%c0, %c0_0] : memref<16x128xf32, #tpu.memory_space<vmem>>, vector<16x128xf32>
    %cst = arith.constant 2.000000e+01 : f32
    %1 = vector.broadcast %cst : f32 to vector<16x128xf32>
    %2 = arith.cmpf ogt, %0, %1 : vector<16x128xf32>
    %cst_1 = arith.constant 2.000000e+01 : f32
    %3 = vector.broadcast %cst_1 : f32 to vector<16x128xf32>
    %4 = arith.minimumf %0, %3 : vector<16x128xf32>
    %5 = math.exp %4 : vector<16x128xf32>
    %6 = math.log1p %5 : vector<16x128xf32>
    %7 = arith.select %2, %0, %6 : vector<16x128xi1>, vector<16x128xf32>
    %cst_2 = arith.constant 5.000000e-02 : f32
    %8 = vector.broadcast %cst_2 : f32 to vector<16x128xf32>
    %9 = arith.mulf %8, %0 : vector<16x128xf32>
    %cst_3 = arith.constant 0.949999988 : f32
    %10 = vector.broadcast %cst_3 : f32 to vector<16x128xf32>
    %11 = arith.mulf %10, %7 : vector<16x128xf32>
    %12 = arith.addf %9, %11 : vector<16x128xf32>
    %cst_4 = arith.constant -6.584450e-01 : f32
    %13 = vector.broadcast %cst_4 : f32 to vector<16x128xf32>
    %14 = arith.addf %12, %13 : vector<16x128xf32>
    %c0_5 = arith.constant 0 : index
    %c0_6 = arith.constant 0 : index
    %15 = vector.load %arg2[%c0_5, %c0_6] : memref<16x128xf32, #tpu.memory_space<vmem>>, vector<16x128xf32>
    tpu.vector_store %arg2[%c0_5, %c0_6], %14 {strides = array<i32>} : memref<16x128xf32, #tpu.memory_space<vmem>>, vector<16x128xf32>,
    return
  }
  func.func @transform_0(%arg0: i32) -> (i32, i32) {
    %c0_i32 = arith.constant 0 : i32
    %c0_i32_0 = arith.constant 0 : i32
    return %arg0, %c0_i32 : i32, i32
  }
  func.func @transform_1(%arg0: i32) -> (i32, i32) {
    %c0_i32 = arith.constant 0 : i32
    %c0_i32_0 = arith.constant 0 : i32
    return %arg0, %c0_i32 : i32, i32
  }
}

</mosaic_0001>

<bundles_post_ra>
// kernel: tpu_custom_call.1
= control target key start
LH: loop header
LB: loop body
LE: loop exit
PB: predicated region body
PF: predicated region fallthrough
CT: control target
= control target key end

     0   :  { %6 = vsyncpa [#allocation3], 0  ;;  %s174_s0 = inlined_call_operand.hbm [shape: f32[16,128], index: 0, kind: input, shape index: {}]   ;;  %s175_s1 = inlined_call_operand.hbm [shape: f32[16,128], index: 1, kind: output, shape index: {}]  }
   0x1   :  { %7 = vsyncpa [#allocation4], 0  ;;  %s12_s8 = sshll.u32 %s174_s0, 4  ;;  %s148_s9 = smov [#allocation2]   ;;  %s13_s8 = int_to_ptr.hbm [resolvable:$true] %s12_s8 }
   0x2   :  { %s14_s10 = sshll.u32 %s148_s9, 4  ;;  %s149_s11 = smov 128   ;;  %s15_s10 = int_to_ptr.vmem [resolvable:$true] %s14_s10 }
   0x3   :  { %s150_s12 = smov 8  }
   0x4   :  { %20 = dma.hbm_to_vmem [thread:$0]  %s13_s8, 256, %s15_s10, [#allocation3], %s149_s11, %s149_s11, %s150_s12  }
   0x5   :  { %144 = dma.done.wait [#allocation3], 256  }
   0x6   :  { %145 = vsyncadd [#allocation3], 4294967040  ;;  %v25_v0 = vld [vmem:[#allocation2] sm:$0xff]  ;;  %v26_v1 = vld [vmem:[#allocation2 + $0x8] sm:$0xff]  ;;  %s151_s0 = smov [#allocation5]   ;;  %s71_s16 = sshll.u32 %s175_s1, 4  ;;  %s72_s16 = int_to_ptr.hbm [resolvable:$true] %s71_s16 }
   0x7   :  { %v29_v2 = vmin.f32 %v25_v0, 20.0  ;;  %v30_v3 = vmin.f32 %v26_v1, 20.0  ;;  %vm27_vm1 = vcmp.gt.f32.partialorder %v25_v0, 20.0  ;;  %vm28_vm3 = vcmp.gt.f32.partialorder %v26_v1, 20.0  ;;  %s69_s13 = sshll.u32 %s151_s0, 4  ;;  %s70_s13 = int_to_ptr.vmem [resolvable:$true] %s69_s13 }
   0x8   :  { %v55_v23 = vmul.f32 0.05, %v25_v0  ;;  %v56_v26 = vmul.f32 0.05, %v26_v1 }
   0x9   :  { %v31_v4 = vmul.f32 1.442695, %v29_v2  ;;  %v33_v5 = vmul.f32 1.442695, %v30_v3 }
   0xb   :  { %88 = vpow2.f32 %v31_v4 }
   0xc   :  { %90 = vpow2.f32 %v33_v5 }
  0x11   :  { %v89_v6 = vpop.eup %88 }
  0x12   :  { %v91_v7 = vpop.eup %90  ;;  %v35_v8 = vadd.f32 1.0, %v89_v6  ;;  %v38_v9 = vmul.f32 -0.5, %v89_v6  ;;  %v41_v13 = vand.u32 2147483647, %v89_v6 }
  0x13   :  { %v44_v10 = vadd.f32 1.0, %v91_v7  ;;  %v47_v11 = vmul.f32 -0.5, %v91_v7  ;;  %v50_v15 = vand.u32 2147483647, %v91_v7 }
  0x14   :  { %92 = vlog2.f32 %v35_v8  ;;  %v39_v12 = vadd.f32 1.0, %v38_v9  ;;  %vm42_vm0 = vcmp.lt.f32.partialorder %v41_v13, 0.0004427343 }
  0x15   :  { %94 = vlog2.f32 %v44_v10  ;;  %v48_v14 = vadd.f32 1.0, %v47_v11  ;;  %vm51_vm2 = vcmp.lt.f32.partialorder %v50_v15, 0.0004427343 }
  0x16   :  { %v40_v16 = vmul.f32 %v89_v6, %v39_v12 }
  0x17   :  { %v49_v18 = vmul.f32 %v91_v7, %v48_v14 }
  0x1a   :  { %v93_v17 = vpop.eup %92 }
  0x1b   :  { %v95_v19 = vpop.eup %94  ;;  %v37_v20 = vmul.f32 0.6931472, %v93_v17 }
  0x1c   :  { %v46_v21 = vmul.f32 0.6931472, %v95_v19 }
  0x1d   :  { %v43_v22 = vsel %vm42_vm0, %v40_v16, %v37_v20 }
  0x1e   :  { %v53_v24 = vsel %vm27_vm1, %v25_v0, %v43_v22  ;;  %v52_v25 = vsel %vm51_vm2, %v49_v18, %v46_v21 }
  0x1f   :  { %v57_v27 = vmul.f32 0.95, %v53_v24  ;;  %v54_v28 = vsel %vm28_vm3, %v26_v1, %v52_v25 }
  0x20   :  { %v58_v29 = vmul.f32 0.95, %v54_v28 }
  0x21   :  { %v59_v30 = vadd.f32 %v57_v27, %v55_v23 }
  0x22   :  { %v60_v31 = vadd.f32 %v58_v29, %v56_v26 }
  0x23   :  { %v61_v32 = vadd.f32 -0.658445, %v59_v30 }
  0x24   :  { %v62_v33 = vadd.f32 -0.658445, %v60_v31 }
  0x25   :  { %63 = vst [vmem:[#allocation5] sm:$0xff] %v61_v32 }
  0x26   :  { %64 = vst [vmem:[#allocation5 + $0x8] sm:$0xff] %v62_v33 }
  0x27   :  { %77 = dma.vmem_to_hbm [thread:$0]  %s70_s13, 256, %s72_s16, [#allocation4], %s149_s11, %s149_s11, %s150_s12  }
  0x28   :  { %146 = dma.done.wait [#allocation4], 256  }
  0x29   :  { %147 = vsyncadd [#allocation4], 4294967040 }
  0x2a   :  { %82 = vsyncpa [#allocation3], 1 }
  0x2b   :  { %83 = vsyncpa [#allocation4], 1 }

</bundles_post_ra>
